<compile_context>
chip_gen: v5e
topology: v5e:2x2
jax: 0.10.0
libtpu: 0.0.40
codegen_flags: <defaults>
</compile_context>

<pallas_src>
import jax
import jax.numpy as jnp
from jax.experimental import pallas as pl
from jax.experimental.pallas import tpu as pltpu


def _parasite_phase1_kernel(x_ref, w_ref, b_ref, o_ref):
    # x_ref: (TB, HT, E)  batch tile
    # w_ref: (HT, 1)      flattened params (column vector, broadcasts over E)
    # b_ref: (1, E)       bias
    # o_ref: (TB, E)      output tile
    x = x_ref[...]                                   # (TB, HT, E)
    w = w_ref[...]                                   # (HT, 1)
    # VPU elementwise multiply + sublane (XLU) reduction over the H*T axis.
    acc = jnp.sum(x * w, axis=1)                     # (TB, E), f32
    o_ref[...] = (acc + b_ref[...]).astype(o_ref.dtype)


def parasite_phase1(x, params, bias, *, target_block_bytes=2 * 1024 * 1024):
    """x: (B, H, T, E) f32; params: (H, T) f32; bias: (1, 1, E) f32 -> (B, 1, E)."""
    B, H, T, E = x.shape
    HT = H * T

    # Free, row-major reshapes in the wrapper (no data movement).
    x_flat = x.reshape(B, HT, E)
    w_col = params.reshape(HT, 1)
    b_flat = bias.reshape(1, E)

    # Batch tile: aim for ~target_block_bytes of x per buffer (double-buffered by
    # the pipeline -> 2x that in VMEM), capped at B.  If we tile (TB < B), keep TB
    # a multiple of 8 so the (TB, E) output block satisfies the (8, 128) rule.
    bytes_per_row = HT * E * 4
    tb = min(B, max(1, target_block_bytes // bytes_per_row))
    if tb < B:
        tb = max(8, (tb // 8) * 8)
    grid = (pl.cdiv(B, tb),)

    out_2d = pl.pallas_call(
        _parasite_phase1_kernel,
        out_shape=jax.ShapeDtypeStruct((B, E), x.dtype),
        grid_spec=pltpu.PrefetchScalarGridSpec(
            num_scalar_prefetch=0,
            grid=grid,
            in_specs=[
                pl.BlockSpec((tb, HT, E), lambda i: (i, 0, 0)),
                pl.BlockSpec((HT, 1), lambda i: (0, 0)),
                pl.BlockSpec((1, E), lambda i: (0, 0)),
            ],
            out_specs=pl.BlockSpec((tb, E), lambda i: (i, 0)),
        ),
        compiler_params=pltpu.CompilerParams(
            # Batch tiles are independent -> shard across both TCs on v7x.
            dimension_semantics=("parallel",),
        ),
    )(x_flat, w_col, b_flat)

    return out_2d.reshape(B, 1, E)   # free reshape: restore the unsqueezed dim


if __name__ == "__main__":
    # Small shapes consistent with the module:
    #   hidden_states (H) = 4, token_size (T) = 8, bias_size (E) = 32, batch B = 2
    B, H, T, E = 2, 4, 8, 32

    key = jax.random.PRNGKey(0)
    kx, kp, kb = jax.random.split(key, 3)

    x = jax.random.normal(kx, (B, H, T, E), dtype=jnp.float32)
    # Module __init__ uses zeros; use deterministic small random values so the
    # kernel path is exercised non-trivially.
    params = 0.02 * jax.random.normal(kp, (H, T), dtype=jnp.float32)
    bias = 0.02 * jax.random.normal(kb, (1, 1, E), dtype=jnp.float32)

    out = parasite_phase1(x, params, bias)
    out = jax.block_until_ready(out)

    # Pure-JAX reference for correctness.
    ref = jnp.einsum("bhte,ht->be", x, params)[:, None, :] + bias
    assert out.shape == (B, 1, E)
    assert jnp.allclose(out, ref, atol=1e-5, rtol=1e-5)

    print("KERNEL_OK")
</pallas_src>

<mosaic_0001>
module attributes {stable_mosaic.version = 11 : i64} {
  func.func @_parasite_phase1_kernel(%arg0: i32, %arg1: memref<2x32x32xf32, #tpu.memory_space<vmem>>, %arg2: memref<32x1xf32, #tpu.memory_space<vmem>>, %arg3: memref<1x32xf32, #tpu.memory_space<vmem>>, %arg4: memref<2x32xf32, #tpu.memory_space<vmem>>) attributes {dimension_semantics = [#tpu.dimension_semantics<parallel>], iteration_bounds = array<i64: 1>, scalar_prefetch = 0 : i64, scratch_operands = 0 : i64, tpu.core_type = #tpu.core_type<tc>, window_params = [{transform_indices = @transform_0, window_bounds = array<i64: 2, 32, 32>}, {pipeline_mode = #tpu.pipeline_mode<synchronous>, transform_indices = @transform_1, window_bounds = array<i64: 32, 1>}, {pipeline_mode = #tpu.pipeline_mode<synchronous>, transform_indices = @transform_2, window_bounds = array<i64: 1, 32>}, {transform_indices = @transform_3, window_bounds = array<i64: 2, 32>}]} {
    %c0 = arith.constant 0 : index
    %c0_0 = arith.constant 0 : index
    %c0_1 = arith.constant 0 : index
    %0 = vector.load %arg1[%c0, %c0_0, %c0_1] : memref<2x32x32xf32, #tpu.memory_space<vmem>>, vector<2x32x32xf32>
    %c0_2 = arith.constant 0 : index
    %c0_3 = arith.constant 0 : index
    %1 = vector.load %arg2[%c0_2, %c0_3] : memref<32x1xf32, #tpu.memory_space<vmem>>, vector<32x1xf32>
    %2 = vector.shape_cast %1 : vector<32x1xf32> to vector<1x32x1xf32>
    %3 = vector.broadcast %2 : vector<1x32x1xf32> to vector<2x32x32xf32>
    %4 = arith.mulf %0, %3 : vector<2x32x32xf32>
    %cst = arith.constant dense<0.000000e+00> : vector<2x32xf32>
    %5 = vector.multi_reduction <add>, %4, %cst [1] : vector<2x32x32xf32> to vector<2x32xf32>
    %c0_4 = arith.constant 0 : index
    %c0_5 = arith.constant 0 : index
    %6 = vector.load %arg3[%c0_4, %c0_5] : memref<1x32xf32, #tpu.memory_space<vmem>>, vector<1x32xf32>
    %7 = vector.broadcast %6 : vector<1x32xf32> to vector<2x32xf32>
    %8 = arith.addf %5, %7 : vector<2x32xf32>
    %c0_6 = arith.constant 0 : index
    %c0_7 = arith.constant 0 : index
    %9 = vector.load %arg4[%c0_6, %c0_7] : memref<2x32xf32, #tpu.memory_space<vmem>>, vector<2x32xf32>
    tpu.vector_store %arg4[%c0_6, %c0_7], %8 {strides = array<i32>} : memref<2x32xf32, #tpu.memory_space<vmem>>, vector<2x32xf32>,
    return
  }
  func.func @transform_0(%arg0: i32) -> (i32, i32, i32) {
    %c0_i32 = arith.constant 0 : i32
    %c0_i32_0 = arith.constant 0 : i32
    %c0_i32_1 = arith.constant 0 : i32
    return %arg0, %c0_i32, %c0_i32_0 : i32, i32, i32
  }
  func.func @transform_1(%arg0: i32) -> (i32, i32) {
    %c0_i32 = arith.constant 0 : i32
    %c0_i32_0 = arith.constant 0 : i32
    %c0_i32_1 = arith.constant 0 : i32
    return %c0_i32, %c0_i32_0 : i32, i32
  }
  func.func @transform_2(%arg0: i32) -> (i32, i32) {
    %c0_i32 = arith.constant 0 : i32
    %c0_i32_0 = arith.constant 0 : i32
    %c0_i32_1 = arith.constant 0 : i32
    return %c0_i32, %c0_i32_0 : i32, i32
  }
  func.func @transform_3(%arg0: i32) -> (i32, i32) {
    %c0_i32 = arith.constant 0 : i32
    %c0_i32_0 = arith.constant 0 : i32
    return %arg0, %c0_i32 : i32, i32
  }
}

</mosaic_0001>

<bundles_post_ra>
// kernel: tpu_custom_call.1
= control target key start
LH: loop header
LB: loop body
LE: loop exit
PB: predicated region body
PF: predicated region fallthrough
CT: control target
= control target key end

     0   :  { %8 = vsyncpa [#allocation3], 0  ;;  %s243_s0 = inlined_call_operand.hbm [shape: f32[2,32,32], index: 0, kind: input, shape index: {}]   ;;  %s244_s1 = inlined_call_operand.vmem [shape: f32[32,1], index: 1, kind: input, shape index: {}]   ;;  %s245_s2 = inlined_call_operand.vmem [shape: f32[1,32], index: 2, kind: input, shape index: {}]   ;;  %s246_s3 = inlined_call_operand.hbm [shape: f32[2,32], index: 3, kind: output, shape index: {}]  }
   0x1   :  { %9 = vsyncpa [#allocation4], 0  ;;  %s14_s14 = sshll.u32 %s243_s0, 4  ;;  %s189_s15 = smov [#allocation2]   ;;  %s15_s14 = int_to_ptr.hbm [resolvable:$true] %s14_s14 }
   0x2   :  { %s16_s16 = sshll.u32 %s189_s15, 4  ;;  %s190_s17 = smov 128   ;;  %s17_s16 = int_to_ptr.vmem [resolvable:$true] %s16_s16 }
   0x3   :  { %s191_s18 = smov 8  }
   0x4   :  { %22 = dma.hbm_to_vmem [thread:$0]  %s15_s14, 1024, %s17_s16, [#allocation3], %s190_s17, %s190_s17, %s191_s18  }
   0x5   :  { %185 = dma.done.wait [#allocation3], 1024  }
   0x6   :  { %186 = vsyncadd [#allocation3], 4294966272  ;;  %v192_v0 = vmov 0   ;;  %v41_v1 = vld [vmem:[%s244_s1 + $0x10] sm:$0xff]  ;;  %v39_v2 = vld [vmem:[%s244_s1] sm:$0xff]  ;;  %vm71_vm0 = vcmask 261120  }
   0x7   :  { %135 = vset.pattern.permute.xlu1 %v192_v0  ;;  %134 = vset.pattern.permute.xlu0 %v192_v0  ;;  %v42_v3 = vld [vmem:[%s244_s1 + $0x18] sm:$0xff]  ;;  %v40_v4 = vld [vmem:[%s244_s1 + $0x8] sm:$0xff]  ;;  %v31_v7 = vld [vmem:[#allocation2] sm:$0xff]  ;;  %s193_s27 = smov [#allocation5]   ;;  %s119_s4 = sshll.u32 %s246_s3, 4  ;;  %vm107_vm1 = vcmask 1041409   ;;  %s120_s4 = int_to_ptr.hbm [resolvable:$true] %s119_s4 }
   0x8   :  { %55 = vperm.xlu1 %135, %v41_v1   ;;  %45 = vperm.xlu0 %134, %v39_v2   ;;  %v35_v8 = vld [vmem:[#allocation2 + $0x20] sm:$0xff]  ;;  %v33_v9 = vld [vmem:[#allocation2 + $0x10] sm:$0xff]  ;;  %v32_v13 = vld [vmem:[#allocation2 + $0x8] sm:$0xff]  ;;  %s117_s28 = sshll.u32 %s193_s27, 4  ;;  %vm110_vm2 = vcmask 254976   ;;  %s118_s28 = int_to_ptr.vmem [resolvable:$true] %s117_s28 }
   0x9   :  { %v37_v10 = vld [vmem:[#allocation2 + $0x30] sm:$0xff]  ;;  %v36_v14 = vld [vmem:[#allocation2 + $0x28] sm:$0xff]  ;;  %v34_v16 = vld [vmem:[#allocation2 + $0x18] sm:$0xff] }
   0xa   :  { %v38_v17 = vld [vmem:[#allocation2 + $0x38] sm:$0xff]  ;;  %v136_v49 = vld [vmem:[%s245_s2] ss:$0 sm:$0xff] }
  0x10   :  { %60 = vperm.xlu1 %135, %v42_v3   ;;  %50 = vperm.xlu0 %134, %v40_v4  }
  0x7a   :  { %v56_v5 = vpop.permute.xlu1 %55  ;;  %v46_v6 = vpop.permute.xlu0 %45 }
  0x7b   :  { %v63_v11 = vmul.f32 %v46_v6, %v31_v7  ;;  %v67_v12 = vmul.f32 %v46_v6, %v35_v8  ;;  %v65_v19 = vmul.f32 %v56_v5, %v33_v9  ;;  %v69_v20 = vmul.f32 %v56_v5, %v37_v10 }
  0x7d   :  { %v72_v23 = vsel %vm71_vm0, %v63_v11, 0.0  ;;  %v85_v24 = vsel %vm71_vm0, %v67_v12, 0.0  ;;  %v75_v31 = vsel %vm71_vm0, %v65_v19, 0.0  ;;  %v88_v32 = vsel %vm71_vm0, %v69_v20, 0.0 }
  0x82   :  { %v61_v15 = vpop.permute.xlu1 %60  ;;  %v51_v18 = vpop.permute.xlu0 %50 }
  0x83   :  { %v64_v21 = vmul.f32 %v51_v18, %v32_v13  ;;  %v68_v22 = vmul.f32 %v51_v18, %v36_v14  ;;  %v66_v25 = vmul.f32 %v61_v15, %v34_v16  ;;  %v70_v26 = vmul.f32 %v61_v15, %v38_v17 }
  0x85   :  { %v73_v27 = vsel %vm71_vm0, %v64_v21, 0.0  ;;  %v86_v28 = vsel %vm71_vm0, %v68_v22, 0.0  ;;  %v77_v35 = vsel %vm71_vm0, %v66_v25, 0.0  ;;  %v90_v36 = vsel %vm71_vm0, %v70_v26, 0.0 }
  0x86   :  { %v74_v29 = vadd.f32 %v73_v27, %v72_v23  ;;  %v87_v30 = vadd.f32 %v86_v28, %v85_v24 }
  0x88   :  { %v76_v33 = vadd.f32 %v75_v31, %v74_v29  ;;  %v89_v34 = vadd.f32 %v88_v32, %v87_v30 }
  0x8a   :  { %v78_v37 = vadd.f32 %v77_v35, %v76_v33  ;;  %v91_v38 = vadd.f32 %v90_v36, %v89_v34 }
  0x8c   :  { %v79_v39 = vrot.slane %v78_v37, 4  ;;  %v92_v40 = vrot.slane %v91_v38, 4 }
  0x8e   :  { %v80_v41 = vadd.f32 %v79_v39, %v78_v37  ;;  %v93_v42 = vadd.f32 %v92_v40, %v91_v38 }
  0x90   :  { %v81_v43 = vrot.slane %v80_v41, 2  ;;  %v94_v44 = vrot.slane %v93_v42, 2 }
  0x92   :  { %v82_v45 = vadd.f32 %v81_v43, %v80_v41  ;;  %v95_v46 = vadd.f32 %v94_v44, %v93_v42 }
  0x94   :  { %v83_v47 = vrot.slane %v82_v45, 1  ;;  %v96_v48 = vrot.slane %v95_v46, 1 }
  0x96   :  { %v84_v50 = vadd.f32 %v83_v47, %v82_v45  ;;  %v97_v51 = vadd.f32 %v96_v48, %v95_v46 }
  0x98   :  { %v103_v52 = vadd.f32 %v136_v49, %v97_v51  ;;  %v102_v53 = vadd.f32 %v136_v49, %v84_v50 }
  0x9a   :  { %v106_v54 = vrot.slane %v103_v52, 7 }
  0x9c   :  { %v108_v55 = vsel %vm107_vm1, %v106_v54, %v102_v53 }
  0x9d   :  { %111 = vst.msk [vmem:[#allocation5] sm:$0x3] %vm110_vm2, %v108_v55 }
  0x9e   :  { %122 = dma.vmem_to_hbm [thread:$0]  %s118_s28, 32, %s120_s4, [#allocation4]  }
  0x9f   :  { %187 = dma.done.wait [#allocation4], 32  }
  0xa0   :  { %188 = vsyncadd [#allocation4], 4294967264 }
  0xa1   :  { %127 = vsyncpa [#allocation3], 1 }
  0xa2   :  { %128 = vsyncpa [#allocation4], 1 }

</bundles_post_ra>
